<compile_context>
chip_gen: v5e
topology: v5e:2x2
jax: 0.10.0
libtpu: 0.0.40
codegen_flags: <defaults>
</compile_context>

<pallas_src>
import functools

import jax
import jax.numpy as jnp
from jax.experimental import pallas as pl
from jax.experimental.pallas import tpu as pltpu


def _round_up(n, m):
    return (n + m - 1) // m * m


def _cdiv(a, b):
    return (a + b - 1) // b


# Working-set budget well under v7x's 64 MiB physical VMEM (also fine on
# v5e / v6e with 128 MiB).
_VMEM_BUDGET = 40 * 1024 * 1024
_VMEM_LIMIT_CAP = 48 * 1024 * 1024
_TM_CANDIDATES = (2048, 1024, 512, 256, 128, 64, 32, 16, 8)


def _vmem_limit(need):
    return int(min(_VMEM_LIMIT_CAP, max(need + (4 << 20), 32 << 20)))


def _cap_for_two_grid_steps(tm, n_tokens):
    # v7x megacore: keep >=2 token blocks so both TensorCores get work.
    if n_tokens > 8:
        tm = min(tm, max(8, _round_up(_cdiv(n_tokens, 2), 8)))
    return tm


# ----------------------------------------------------------------------------
# Single linear:  y = x @ W + b   (token-tiled, optional Dout tiling)
# ----------------------------------------------------------------------------

def _linear_vmem_need(tm, din, tn, x_bytes, w_bytes, out_bytes, w_dbuf):
    wbufs = 2 if w_dbuf else 1
    return (2 * tm * din * x_bytes            # x tiles (double-buffered)
            + 2 * tm * tn * out_bytes         # output tiles (double-buffered)
            + tm * tn * 4 + tm * din * 2      # f32 acc / bf16-cast headroom
            + wbufs * din * tn * w_bytes      # weight tile(s)
            + wbufs * 8 * tn * 4)             # bias (sublane-padded)


def _pick_linear_tiles(n_tokens, din, dout, x_bytes, w_bytes, out_bytes):
    tn_candidates = [dout] + [t for t in (2048, 1024, 512, 256, 128) if t < dout]
    tm_upper = max(8, _round_up(n_tokens, 8))
    for tn in tn_candidates:
        w_dbuf = tn != dout                    # weight varies with j -> double-buffer
        for tm in _TM_CANDIDATES:
            if tm > tm_upper:
                continue
            if _linear_vmem_need(tm, din, tn, x_bytes, w_bytes, out_bytes,
                                 w_dbuf) <= _VMEM_BUDGET:
                return tm, tn
    # TODO(synk): projections this large would additionally need K (Din)
    # tiling with an f32 VMEM accumulator; not required for HCTNet dims.
    return 8, min(dout, 128)


def _linear_kernel(x_ref, w_ref, b_ref, o_ref):
    # Cast inside the kernel: x is read from HBM exactly once, in its own dtype.
    x = x_ref[...].astype(w_ref.dtype)
    acc = jnp.dot(x, w_ref[...], preferred_element_type=jnp.float32)
    o_ref[...] = (acc + b_ref[...]).astype(o_ref.dtype)


def linear_pallas(x2d, w, b2d, *, out_dtype=None):
    """Token-tiled `x2d @ w + b`.

    x2d: [N, Din] (any float dtype; cast to w.dtype inside the kernel).
    w:   [Din, Dout] already in the MXU compute dtype (see prepare_* below).
    b2d: [1, Dout] float32.
    """
    N, Din = x2d.shape
    Dout = w.shape[1]
    out_dtype = out_dtype or x2d.dtype

    x_bytes = jnp.dtype(x2d.dtype).itemsize
    w_bytes = jnp.dtype(w.dtype).itemsize
    out_bytes = jnp.dtype(out_dtype).itemsize
    tm, tn = _pick_linear_tiles(N, Din, Dout, x_bytes, w_bytes, out_bytes)
    tm = _cap_for_two_grid_steps(tm, N)

    grid = (_cdiv(N, tm), _cdiv(Dout, tn))
    w_invariant = grid[1] == 1
    need = _linear_vmem_need(tm, Din, tn, x_bytes, w_bytes, out_bytes,
                             not w_invariant)

    if w_invariant:
        # Grid-invariant operands: single-buffered (double-buffering is waste).
        w_spec = pl.BlockSpec((Din, tn), lambda i, j: (0, j),
                              pipeline_mode=pl.Buffered(1))
        b_spec = pl.BlockSpec((1, tn), lambda i, j: (0, j),
                              pipeline_mode=pl.Buffered(1))
    else:
        w_spec = pl.BlockSpec((Din, tn), lambda i, j: (0, j))
        b_spec = pl.BlockSpec((1, tn), lambda i, j: (0, j))

    return pl.pallas_call(
        _linear_kernel,
        out_shape=jax.ShapeDtypeStruct((N, Dout), out_dtype),
        grid=grid,
        in_specs=[
            pl.BlockSpec((tm, Din), lambda i, j: (i, 0)),
            w_spec,
            b_spec,
        ],
        out_specs=pl.BlockSpec((tm, tn), lambda i, j: (i, j)),
        compiler_params=pltpu.CompilerParams(
            dimension_semantics=("parallel", "parallel"),
            vmem_limit_bytes=_vmem_limit(need)),
    )(x2d, w, b2d)


# ----------------------------------------------------------------------------
# Fully fused path:  y = fn(x @ W_in + b_in) @ W_out + b_out   (fn elementwise)
# ----------------------------------------------------------------------------

def _fused_vmem_need(tm, din, dmid, dfin, x_bytes, w_bytes, out_bytes):
    return (2 * tm * din * x_bytes                  # x tiles
            + 2 * tm * dfin * out_bytes             # output tiles
            + tm * dmid * 4 + tm * max(din, dfin) * 4   # f32 intermediates
            + (din * dmid + dmid * dfin) * w_bytes  # W_in + W_out resident
            + 8 * (dmid + dfin) * 4)                # biases (sublane-padded)


def _pick_fused_tm(n_tokens, din, dmid, dfin, x_bytes, w_bytes, out_bytes):
    tm_upper = max(8, _round_up(n_tokens, 8))
    for tm in _TM_CANDIDATES:
        if tm > tm_upper:
            continue
        if _fused_vmem_need(tm, din, dmid, dfin, x_bytes, w_bytes,
                            out_bytes) <= _VMEM_BUDGET:
            return tm
    return None   # weights too large to keep resident -> caller falls back


def _fused_kernel(x_ref, w1_ref, b1_ref, w2_ref, b2_ref, o_ref, *, fn):
    x = x_ref[...].astype(w1_ref.dtype)
    h = jnp.dot(x, w1_ref[...], preferred_element_type=jnp.float32) + b1_ref[...]
    h = fn(h)                                  # elementwise fn, f32, stays in VMEM
    y = jnp.dot(h.astype(w2_ref.dtype), w2_ref[...],
                preferred_element_type=jnp.float32) + b2_ref[...]
    o_ref[...] = y.astype(o_ref.dtype)


def fused_project_in_out_pallas(x2d, w_in, b_in2d, w_out, b_out2d, fn, *,
                                out_dtype):
    """Single-kernel project_in -> fn -> project_out. Returns None if the two
    weights cannot stay resident in the VMEM budget (caller falls back)."""
    N, Din = x2d.shape
    Dmid = w_in.shape[1]
    Dfin = w_out.shape[1]

    x_bytes = jnp.dtype(x2d.dtype).itemsize
    w_bytes = jnp.dtype(w_in.dtype).itemsize
    out_bytes = jnp.dtype(out_dtype).itemsize
    tm = _pick_fused_tm(N, Din, Dmid, Dfin, x_bytes, w_bytes, out_bytes)
    if tm is None:
        return None
    tm = _cap_for_two_grid_steps(tm, N)
    need = _fused_vmem_need(tm, Din, Dmid, Dfin, x_bytes, w_bytes, out_bytes)

    resident = dict(pipeline_mode=pl.Buffered(1))
    return pl.pallas_call(
        functools.partial(_fused_kernel, fn=fn),
        out_shape=jax.ShapeDtypeStruct((N, Dfin), out_dtype),
        grid=(_cdiv(N, tm),),
        in_specs=[
            pl.BlockSpec((tm, Din), lambda i: (i, 0)),
            pl.BlockSpec((Din, Dmid), lambda i: (0, 0), **resident),
            pl.BlockSpec((1, Dmid), lambda i: (0, 0), **resident),
            pl.BlockSpec((Dmid, Dfin), lambda i: (0, 0), **resident),
            pl.BlockSpec((1, Dfin), lambda i: (0, 0), **resident),
        ],
        out_specs=pl.BlockSpec((tm, Dfin), lambda i: (i, 0)),
        compiler_params=pltpu.CompilerParams(
            dimension_semantics=("parallel",),
            vmem_limit_bytes=_vmem_limit(need)),
    )(x2d, w_in, b_in2d, w_out, b_out2d)


# ----------------------------------------------------------------------------
# ProjectInOut wrapper
# ----------------------------------------------------------------------------

def prepare_projection_params(w_in, b_in, w_out, b_out,
                              compute_dtype=jnp.bfloat16):
    """One-time weight prep, hoisted out of the forward pass.

    Weights are stored (fan_in, fan_out) — already transposed for x @ W — and
    cast to the MXU compute dtype; biases become f32 row vectors.  Pass
    compute_dtype=jnp.float32 if full f32 parity with nn.Linear is required.
    """
    return (jnp.asarray(w_in, compute_dtype),
            jnp.asarray(b_in, jnp.float32).reshape(1, -1),
            jnp.asarray(w_out, compute_dtype),
            jnp.asarray(b_out, jnp.float32).reshape(1, -1))


def make_project_in_out(fn, *, fn_is_elementwise=False, out_dtype=None):
    """Build a jitted ProjectInOut forward.

    Call as forward(x, params, *fn_args, **fn_kwargs) with params from
    prepare_projection_params, or params=None for the dim_in == dim_out
    nn.Identity() path.
    """

    @jax.jit
    def forward(x, params=None, *fn_args, **fn_kwargs):
        if params is None:                         # nn.Identity() projections
            return fn(x, *fn_args, **fn_kwargs)
        w_in, b_in2d, w_out, b_out2d = params
        lead = x.shape[:-1]
        x2d = x.reshape(-1, x.shape[-1])
        odt = out_dtype or x.dtype

        if fn_is_elementwise and not fn_args and not fn_kwargs:
            y2d = fused_project_in_out_pallas(
                x2d, w_in, b_in2d, w_out, b_out2d, fn, out_dtype=odt)
            if y2d is not None:
                return y2d.reshape(*lead, w_out.shape[1])

        # Unfused fallback: two Pallas projections around an arbitrary fn.
        # TODO(synk): `fn` is an arbitrary wrapped nn.Module in PyTorch (e.g. a
        # Transformer branch in HCTNet); here it runs as a plain JAX callable
        # between the two Pallas projection kernels.
        h = linear_pallas(x2d, w_in, b_in2d).reshape(*lead, w_in.shape[1])
        h = fn(h, *fn_args, **fn_kwargs)
        y = linear_pallas(h.reshape(-1, h.shape[-1]), w_out, b_out2d,
                          out_dtype=odt)
        return y.reshape(*lead, w_out.shape[1])

    return forward


def _init_linear(key, fan_in, fan_out, dtype=jnp.float32):
    """nn.Linear default init (uniform +/- 1/sqrt(fan_in)); weight stored as
    (fan_in, fan_out) — i.e. already transposed for x @ W."""
    kw, kb = jax.random.split(key)
    bound = 1.0 / jnp.sqrt(fan_in)
    w = jax.random.uniform(kw, (fan_in, fan_out), dtype, minval=-bound, maxval=bound)
    b = jax.random.uniform(kb, (fan_out,), dtype, minval=-bound, maxval=bound)
    return w, b


if __name__ == "__main__":
    B, S = 2, 8
    dim_in, dim_out = 32, 64            # dim_in != dim_out -> real projections

    key = jax.random.PRNGKey(0)
    kx, k1, k2 = jax.random.split(key, 3)

    x = jax.random.normal(kx, (B, S, dim_in), jnp.float32)
    w_in, b_in = _init_linear(k1, dim_in, dim_out)     # Linear(dim_in -> dim_out)
    w_out, b_out = _init_linear(k2, dim_out, dim_in)   # Linear(dim_out -> dim_in)

    # Stand-in for the wrapped inner module `fn` (elementwise here).
    fn = lambda t: jax.nn.gelu(t, approximate=True)

    params = prepare_projection_params(w_in, b_in, w_out, b_out)

    # Fused path: one Pallas kernel, no HBM intermediate.
    fwd_fused = make_project_in_out(fn, fn_is_elementwise=True)
    out = fwd_fused(x, params)
    jax.block_until_ready(out)
    assert out.shape == (B, S, dim_in)

    # Reference mimicking bf16 MXU inputs with f32 accumulation.
    def _ref_linear(t, w, b):
        return jnp.dot(t.astype(jnp.bfloat16), w.astype(jnp.bfloat16),
                       preferred_element_type=jnp.float32) + b

    ref = _ref_linear(fn(_ref_linear(x, w_in, b_in)), w_out, b_out)
    assert jnp.allclose(out, ref, atol=5e-3, rtol=5e-3), "fused path mismatch"

    # Unfused path (arbitrary fn): two Pallas projections around fn.
    fwd_unfused = make_project_in_out(fn, fn_is_elementwise=False)
    out_unfused = fwd_unfused(x, params)
    jax.block_until_ready(out_unfused)
    assert jnp.allclose(out_unfused, ref, atol=5e-3, rtol=5e-3), "unfused mismatch"

    # Identity path (dim_in == dim_out): projections are nn.Identity().
    out_id = fwd_fused(x, None)
    jax.block_until_ready(out_id)
    assert jnp.allclose(out_id, fn(x), atol=1e-6), "identity path mismatch"

    print("KERNEL_OK")
</pallas_src>

<mosaic_0001>
module attributes {stable_mosaic.version = 11 : i64} {
  func.func @_fused_kernel(%arg0: i32, %arg1: memref<8x32xf32, #tpu.memory_space<vmem>>, %arg2: memref<32x64xbf16, #tpu.memory_space<vmem>>, %arg3: memref<1x64xf32, #tpu.memory_space<vmem>>, %arg4: memref<64x32xbf16, #tpu.memory_space<vmem>>, %arg5: memref<1x32xf32, #tpu.memory_space<vmem>>, %arg6: memref<8x32xf32, #tpu.memory_space<vmem>>) attributes {dimension_semantics = [#tpu.dimension_semantics<parallel>], iteration_bounds = array<i64: 2>, scalar_prefetch = 0 : i64, scratch_operands = 0 : i64, tpu.core_type = #tpu.core_type<tc>, window_params = [{transform_indices = @transform_0, window_bounds = array<i64: 8, 32>}, {pipeline_mode = #tpu.pipeline_mode<synchronous>, transform_indices = @transform_1, window_bounds = array<i64: 32, 64>}, {pipeline_mode = #tpu.pipeline_mode<synchronous>, transform_indices = @transform_2, window_bounds = array<i64: 1, 64>}, {pipeline_mode = #tpu.pipeline_mode<synchronous>, transform_indices = @transform_3, window_bounds = array<i64: 64, 32>}, {pipeline_mode = #tpu.pipeline_mode<synchronous>, transform_indices = @transform_4, window_bounds = array<i64: 1, 32>}, {transform_indices = @transform_5, window_bounds = array<i64: 8, 32>}]} {
    %c0 = arith.constant 0 : index
    %c0_0 = arith.constant 0 : index
    %0 = vector.load %arg1[%c0, %c0_0] : memref<8x32xf32, #tpu.memory_space<vmem>>, vector<8x32xf32>
    %1 = arith.truncf %0 : vector<8x32xf32> to vector<8x32xbf16>
    %c0_1 = arith.constant 0 : index
    %c0_2 = arith.constant 0 : index
    %2 = vector.load %arg2[%c0_1, %c0_2] : memref<32x64xbf16, #tpu.memory_space<vmem>>, vector<32x64xbf16>
    %cst = arith.constant dense<0.000000e+00> : vector<8x64xf32>
    %3 = tpu.matmul %1, %2, %cst {dimension_numbers = #tpu.dot_dimension_numbers<[1], [0], [0], [1], [0, 0, 1, 1], [], []>} : vector<8x32xbf16>, vector<32x64xbf16>, vector<8x64xf32> -> vector<8x64xf32>
    %c0_3 = arith.constant 0 : index
    %c0_4 = arith.constant 0 : index
    %4 = vector.load %arg3[%c0_3, %c0_4] : memref<1x64xf32, #tpu.memory_space<vmem>>, vector<1x64xf32>
    %5 = vector.broadcast %4 : vector<1x64xf32> to vector<8x64xf32>
    %6 = arith.addf %3, %5 : vector<8x64xf32>
    %7 = arith.mulf %6, %6 : vector<8x64xf32>
    %8 = arith.mulf %6, %7 : vector<8x64xf32>
    %cst_5 = arith.constant 4.471500e-02 : f32
    %9 = vector.broadcast %cst_5 : f32 to vector<8x64xf32>
    %10 = arith.mulf %9, %8 : vector<8x64xf32>
    %11 = arith.addf %6, %10 : vector<8x64xf32>
    %cst_6 = arith.constant 0.797884583 : f32
    %12 = vector.broadcast %cst_6 : f32 to vector<8x64xf32>
    %13 = arith.mulf %12, %11 : vector<8x64xf32>
    %14 = math.tanh %13 : vector<8x64xf32>
    %cst_7 = arith.constant 1.000000e+00 : f32
    %15 = vector.broadcast %cst_7 : f32 to vector<8x64xf32>
    %16 = arith.addf %15, %14 : vector<8x64xf32>
    %cst_8 = arith.constant 5.000000e-01 : f32
    %17 = vector.broadcast %cst_8 : f32 to vector<8x64xf32>
    %18 = arith.mulf %17, %16 : vector<8x64xf32>
    %19 = arith.mulf %6, %18 : vector<8x64xf32>
    %20 = arith.truncf %19 : vector<8x64xf32> to vector<8x64xbf16>
    %c0_9 = arith.constant 0 : index
    %c0_10 = arith.constant 0 : index
    %21 = vector.load %arg4[%c0_9, %c0_10] : memref<64x32xbf16, #tpu.memory_space<vmem>>, vector<64x32xbf16>
    %cst_11 = arith.constant dense<0.000000e+00> : vector<8x32xf32>
    %22 = tpu.matmul %20, %21, %cst_11 {dimension_numbers = #tpu.dot_dimension_numbers<[1], [0], [0], [1], [0, 0, 1, 1], [], []>} : vector<8x64xbf16>, vector<64x32xbf16>, vector<8x32xf32> -> vector<8x32xf32>
    %c0_12 = arith.constant 0 : index
    %c0_13 = arith.constant 0 : index
    %23 = vector.load %arg5[%c0_12, %c0_13] : memref<1x32xf32, #tpu.memory_space<vmem>>, vector<1x32xf32>
    %24 = vector.broadcast %23 : vector<1x32xf32> to vector<8x32xf32>
    %25 = arith.addf %22, %24 : vector<8x32xf32>
    %c0_14 = arith.constant 0 : index
    %c0_15 = arith.constant 0 : index
    %26 = vector.load %arg6[%c0_14, %c0_15] : memref<8x32xf32, #tpu.memory_space<vmem>>, vector<8x32xf32>
    tpu.vector_store %arg6[%c0_14, %c0_15], %25 {strides = array<i32>} : memref<8x32xf32, #tpu.memory_space<vmem>>, vector<8x32xf32>,
    return
  }
  func.func @transform_0(%arg0: i32) -> (i32, i32) {
    %c0_i32 = arith.constant 0 : i32
    %c0_i32_0 = arith.constant 0 : i32
    return %arg0, %c0_i32 : i32, i32
  }
  func.func @transform_1(%arg0: i32) -> (i32, i32) {
    %c0_i32 = arith.constant 0 : i32
    %c0_i32_0 = arith.constant 0 : i32
    %c0_i32_1 = arith.constant 0 : i32
    return %c0_i32, %c0_i32_0 : i32, i32
  }
  func.func @transform_2(%arg0: i32) -> (i32, i32) {
    %c0_i32 = arith.constant 0 : i32
    %c0_i32_0 = arith.constant 0 : i32
    %c0_i32_1 = arith.constant 0 : i32
    return %c0_i32, %c0_i32_0 : i32, i32
  }
  func.func @transform_3(%arg0: i32) -> (i32, i32) {
    %c0_i32 = arith.constant 0 : i32
    %c0_i32_0 = arith.constant 0 : i32
    %c0_i32_1 = arith.constant 0 : i32
    return %c0_i32, %c0_i32_0 : i32, i32
  }
  func.func @transform_4(%arg0: i32) -> (i32, i32) {
    %c0_i32 = arith.constant 0 : i32
    %c0_i32_0 = arith.constant 0 : i32
    %c0_i32_1 = arith.constant 0 : i32
    return %c0_i32, %c0_i32_0 : i32, i32
  }
  func.func @transform_5(%arg0: i32) -> (i32, i32) {
    %c0_i32 = arith.constant 0 : i32
    %c0_i32_0 = arith.constant 0 : i32
    return %arg0, %c0_i32 : i32, i32
  }
}

</mosaic_0001>

<bundles_post_ra>
// kernel: forward.1
= control target key start
LH: loop header
LB: loop body
LE: loop exit
PB: predicated region body
PF: predicated region fallthrough
CT: control target
= control target key end

     0   :  { %10 = vsyncpa [#allocation3], 0  ;;  %s689_s0 = inlined_call_operand.vmem [shape: f32[16,32], index: 0, kind: input, shape index: {}]   ;;  %s690_s1 = inlined_call_operand.vmem [shape: bf16[32,64], index: 1, kind: input, shape index: {}]   ;;  %s691_s2 = inlined_call_operand.vmem [shape: f32[1,64], index: 2, kind: input, shape index: {}]   ;;  %s692_s3 = inlined_call_operand.vmem [shape: bf16[64,32], index: 3, kind: input, shape index: {}]   ;;  %s693_s4 = inlined_call_operand.vmem [shape: f32[1,32], index: 4, kind: input, shape index: {}]   ;;  %s694_s5 = inlined_call_operand.hbm [shape: f32[16,32], index: 5, kind: output, shape index: {}]  }
   0x1   :  { %12 = vsyncpa [#allocation3 + $0x1], 0  ;;  %s578_s18 = smov 0   ;;  %s580_s19 = smov 0  }
   0x2   :  { %s582_s20 = smov 0   ;;  %s584_s21 = smov 0  }
   0x3 LB: > { %s599_s22 = sadd.s32 4294967295, %s546_s21   ;;  %s399_s23 = sadd.s32 4294967294, %s546_s21   ;;  %s546_s21 = sphi %s584_s21, %s700_s21   ;;  %s542_s20 = sphi %s582_s20, %s699_s20   ;;  %s538_s19 = sphi %s580_s19, %s698_s19   ;;  %s534_s18 = sphi %s578_s18, %s697_s18  }
   0x4   : > { %s603_s24 = sadd.s32 1, %s546_s21   ;;  %s135_s25 = sadd.s32 1, %s542_s20 }
   0x5   : > { %s132_s26 = ssub.s32 %s546_s21, %s603_s24  ;;  %p145_p0 = scmp.ne.s32.totalorder %s542_s20, %s538_s19 }
   0x6   : > { %p133_p1 = scmp.eq.s32.totalorder %s132_s26, 0  ;;  %p146_p2 = scmp.eq.s32.totalorder %s599_s22, 1 }
   0x7   : > { %p151_p3 = scmp.ne.s32.totalorder %s538_s19, %s534_s18  ;;  %p152_p4 = scmp.eq.s32.totalorder %s399_s23, 1 }
   0x8   : > { %s614_s27 = scalar_select %p133_p1, %s542_s20, %s135_s25  }
   0x9   : > { %p616_p5 = por %p146_p2, %p145_p0  ;;  %p620_p6 = por %p152_p4, %p151_p3 }
   0xa   : > { %p402_p7 = scmp.ge.s32.totalorder %s546_s21, 1  ;;  %p189_p8 = scmp.lt.s32.totalorder %s546_s21, 3 }
   0xc   : > { %p190_p9 = pnand %p402_p7, %p189_p8 }
   0xd   : > { %p216_p10 = scmp.lt.s32.totalorder (!%p190_p9), %s599_s22, 1  ;;  %s213_s8 = sand.u32 (!%p190_p9), 1, %s538_s19  }
   0xe   : > { %193 = sbr.rel (%p190_p9) target bundleno = 314 (0x13a), region = 40  ;;  %s504_s7 = scalar_lea.hbm (!%p190_p9), %s694_s5, 16 }
  0x13   : > { %v436_v0 = vld [vmem:[%s690_s1 + $0x8] sm:$0xff]  ;;  %v435_v1 = vld [vmem:[%s690_s1] sm:$0xff]  ;;  %s217_s9 = scalar_select %p216_p10, %s599_s22, 1  ;;  %vm243_vm0 = vcmask 261120   ;;  %v440_v4 = vld [vmem:[%s692_s3 + $0x18] sm:$0xff]  ;;  %vm306_vm1 = vcmask 523264  }
  0x14   : > { %253 = vmatpush.bf16.msra.mxu0 %v436_v0  ;;  %314 = vmatpush.bf16.msra.mxu1 %v440_v4  ;;  %v439_v5 = vld [vmem:[%s692_s3 + $0x10] sm:$0xff]  ;;  %v438_v6 = vld [vmem:[%s692_s3 + $0x8] sm:$0xff]  ;;  %v437_v7 = vld [vmem:[%s692_s3] sm:$0xff] }
  0x15   : > { %s404_s10 = sshll.u32 %s217_s9, 3  ;;  %v480_v8 = vld [vmem:[%s691_s2] ss:$0 sm:$0xff]  ;;  %s432_s9 = sshll.u32 %s599_s22, 3 }
  0x16   : > { %s219_s13 = scalar_lea.vmem %s689_s0, %s404_s10  ;;  %s403_s10 = sshll.u32 %s213_s8, 3  ;;  %v481_v22 = vld [vmem:[%s693_s4] ss:$0 sm:$0xff] }
  0x17   : > { %v221_v2 = vld [vmem:[%s219_s13] sm:$0xff]  ;;  %s335_s13 = scalar_lea.hbm %s694_s5, %s432_s9  ;;  %s215_s16 = scalar_lea.vmem [#allocation2], %s403_s10 }
  0x18   : > { %254 = vmatpush.bf16.msra.mxu0 %v435_v1  ;;  %v222_v3 = vpack.c.bf16 %v221_v2, %v221_v2  ;;  %315 = vmatpush.bf16.msra.mxu1 %v439_v5  ;;  %s337_s17 = sshll.u32 %s215_s16, 4  ;;  %s339_s23 = sshll.u32 %s335_s13, 4  ;;  %s338_s17 = int_to_ptr.vmem [resolvable:$true] %s337_s17  ;;  %s340_s23 = int_to_ptr.hbm [resolvable:$true] %s339_s23 }
  0x19   : > { %s325_s22 = scalar_lea.sflag [#allocation3], %s213_s8  ;;  %s498_s25 = sshra.s32 %s340_s23, 4  ;;  %s499_s25 = int_to_ptr.hbm [resolvable:$true] %s498_s25 }
  0x1a   : > { %s500_s26 = scalar_lea.hbm %s499_s25, 8  ;;  %p505_p0 = scmp.lt.s32.totalorder %s499_s25, %s694_s5 }
  0x1b   : > { %413 = vmatmul.msk.bf16.vlgmr.msra.gmra.mxu0 %vm243_vm0, %v222_v3  ;;  %p501_p11 = scmp.ne.s32.totalorder %s499_s25, %s500_s26  ;;  %p506_p1 = scmp.lt.s32.totalorder %s504_s7, %s500_s26 }
  0x1c   : > { %316 = vmatpush.bf16.msra.mxu1 %v438_v6 }
  0x1d   : > { %p502_p12 = pnand %p501_p11, %p616_p5  ;;  %p507_p2 = por %p506_p1, %p505_p0 }
  0x1f   : > { %p503_p13 = pneg %p502_p12 }
  0x20   : > { %317 = vmatpush.bf16.msra.mxu1 %v437_v7 }
  0x21   : > { %p508_p3 = pnand %p507_p2, %p503_p13 }
  0x98   : > { %v256_v9 = vpop.f32.mrf.mxu0 }
  0x99   : > { %v257_v10 = vadd.f32 %v480_v8, %v256_v9 }
  0x9b   : > { %v260_v11 = vmul.f32 %v257_v10, %v257_v10 }
  0x9d   : > { %v261_v12 = vmul.f32 %v260_v11, %v257_v10 }
  0x9f   : > { %v262_v13 = vmul.f32 0.044715, %v261_v12 }
  0xa0   : > { %v258_v14 = vpop.f32.mrf.mxu0 }
  0xa1   : > { %v263_v15 = vadd.f32 %v262_v13, %v257_v10 }
  0xa3   : > { %v264_v16 = vmul.f32 0.7978846, %v263_v15 }
  0xa5   : > { %482 = vtanh.f32 %v264_v16 }
  0xab   : > { %v483_v17 = vpop.eup %482 }
  0xac   : > { %v266_v18 = vadd.f32 1.0, %v483_v17 }
  0xae   : > { %v267_v19 = vmul.f32 0.5, %v266_v18 }
  0xb0   : > { %v268_v20 = vmul.f32 %v267_v19, %v257_v10 }
  0xb2   : > { %v269_v21 = vpack.c.bf16 %v268_v20, %v268_v20 }
  0xb4   : > { %430 = vmatmul.msk.bf16.vlgmr.msra.gmra.mxu1 %vm306_vm1, %v269_v21 }
 0x131   : > { %v319_v23 = vpop.f32.mrf.mxu1 }
 0x132   : > { %v320_v24 = vadd.f32 %v481_v22, %v319_v23 }
 0x134   : > { %323 = vst.msk [vmem:[%s215_s16] sm:$0xff] %vm243_vm0, %v320_v24 }
 0x135   : > { %511 = shalt.err (!%p508_p3)
}
 0x136   : > { %441 = dma.vmem_to_hbm [thread:$0]  (%p616_p5), %s338_s17, 128, %s340_s23, %s325_s22  }
 0x139   : > { %v321_v25 = vpop.f32.mrf.mxu1 }
 0x13a PF: > { %p447_p4 = scmp.ge.s32.totalorder %s546_s21, 2  ;;  %s351_s8 = sand.u32 1, %s534_s18  }
 0x13b   : > { %s352_s11 = scalar_lea.sflag [#allocation3], %s351_s8 }
 0x13c   : > { %p444_p7 = pnand %p447_p4, %p620_p6 }
 0x13e   : > { %p445_p8 = pneg %p444_p7 }
 0x140   : > { %529 = dma.done.wait (%p445_p8), %s352_s11, 128  }
 0x141   : > { %531 = vsyncadd (%p445_p8), %s352_s11, 4294967168  ;;  %p15_p9 = scmp.ge.s32.totalorder %s603_s24, 4   ;;  %s697_s18 = smov %s538_s19 }
 0x142   : > { %s698_s19 = smov %s542_s20  ;;  %s699_s20 = smov %s614_s27 }
 0x143   : > { %s700_s21 = smov %s603_s24  ;;  %17 = sbr.rel (!%p15_p9) target bundleno = 3 (0x3), region = 75 }
 0x148   :  { %358 = vsyncpa [#allocation3], 1 }
 0x149   :  { %360 = vsyncpa [#allocation3 + $0x1], 1 }

</bundles_post_ra>
